<compile_context>
chip_gen: v7x
topology: tpu7x:2x2x1
jax: 0.10.0
libtpu: 0.0.40
codegen_flags: <defaults>
</compile_context>

<pallas_src>
import functools
import math

import jax
import jax.numpy as jnp
from jax import lax
from jax.experimental import pallas as pl
from jax.experimental.pallas import tpu as pltpu


def _layernorm(h, gamma, beta, eps=1e-5):
    mu = jnp.mean(h, axis=-1, keepdims=True)
    var = jnp.mean((h - mu) ** 2, axis=-1, keepdims=True)
    return (h - mu) * lax.rsqrt(var + eps) * gamma + beta


def _gelu_tanh(x):
    c = 0.7978845608028654  # sqrt(2/pi)
    return 0.5 * x * (1.0 + jnp.tanh(c * (x + 0.044715 * x * x * x)))


def block_kernel(n_head,
                 x_ref,
                 ln1g_ref, ln1b_ref,
                 wqkv_ref, bqkv_ref,
                 wo_ref, bo_ref,
                 ln2g_ref, ln2b_ref,
                 wfc_ref, bfc_ref,
                 wp_ref, bp_ref,
                 out_ref):
    x = x_ref[0].astype(jnp.float32)          # (T, C) f32
    T, C = x.shape
    hd = C // n_head
    scale = 1.0 / math.sqrt(hd)
    mm_dtype = wqkv_ref.dtype                 # bf16 matmul operand dtype

    # ---- attention branch: x += W_o @ (softmax(mask(Q K^T)) V) ------------
    h = _layernorm(x, ln1g_ref[0], ln1b_ref[0])
    qkv = jnp.dot(h.astype(mm_dtype), wqkv_ref[...],
                  preferred_element_type=jnp.float32) + bqkv_ref[0]   # (T, 3C)

    row = lax.broadcasted_iota(jnp.int32, (T, T), 0)
    col = lax.broadcasted_iota(jnp.int32, (T, T), 1)
    causal = row >= col

    # Per-head 2-D dots on static slices; no (T, H, hd) transposes, no (H,T,T).
    head_outs = []
    for hidx in range(n_head):
        lo = hidx * hd
        q_h = qkv[:, lo:lo + hd].astype(mm_dtype)             # (T, hd)
        k_h = qkv[:, C + lo:C + lo + hd].astype(mm_dtype)     # (T, hd)
        v_h = qkv[:, 2 * C + lo:2 * C + lo + hd]              # (T, hd) f32

        # q @ k^T without an explicit transpose (contract both last dims).
        s = lax.dot_general(q_h, k_h, (((1,), (1,)), ((), ())),
                            preferred_element_type=jnp.float32) * scale
        s = jnp.where(causal, s, -1e30)
        m = jnp.max(s, axis=-1, keepdims=True)
        e = jnp.exp(s - m)
        denom = jnp.sum(e, axis=-1, keepdims=True)
        p = e * pl.reciprocal(denom, approx=True)             # EUP slot
        y_h = jnp.dot(p.astype(mm_dtype), v_h.astype(mm_dtype),
                      preferred_element_type=jnp.float32)     # (T, hd)
        head_outs.append(y_h)
    y = jnp.concatenate(head_outs, axis=-1)                   # (T, C)

    y = jnp.dot(y.astype(mm_dtype), wo_ref[...],
                preferred_element_type=jnp.float32) + bo_ref[0]
    x = x + y

    # ---- MLP branch: x += W_p gelu_tanh(W_fc LN2(x)) -----------------------
    h2 = _layernorm(x, ln2g_ref[0], ln2b_ref[0])
    f = jnp.dot(h2.astype(mm_dtype), wfc_ref[...],
                preferred_element_type=jnp.float32) + bfc_ref[0]
    g = _gelu_tanh(f)
    o = jnp.dot(g.astype(mm_dtype), wp_ref[...],
                preferred_element_type=jnp.float32) + bp_ref[0]
    x = x + o

    out_ref[0] = x.astype(out_ref.dtype)


def block_forward(x, params, n_head):
    B, T, C = x.shape
    (ln1g, ln1b, wqkv, bqkv, wo, bo, ln2g, ln2b, wfc, bfc, wp, bp) = params

    # Cast matmul weights to bf16 (MXU operands); LN params / biases stay f32
    # so all LayerNorm/softmax statistics and bias adds remain f32.
    mm = jnp.bfloat16
    weight_args = (ln1g, ln1b,
                   wqkv.astype(mm), bqkv,
                   wo.astype(mm), bo,
                   ln2g, ln2b,
                   wfc.astype(mm), bfc,
                   wp.astype(mm), bp)

    # Weights are grid-invariant: place the whole array in VMEM once,
    # single-buffered (no per-step pipelining / double-buffering).
    vmem_resident = pl.BlockSpec(memory_space=pltpu.MemorySpace.VMEM)
    in_specs = [pl.BlockSpec((1, T, C), lambda b: (b, 0, 0))]
    in_specs += [vmem_resident] * len(weight_args)

    return pl.pallas_call(
        functools.partial(block_kernel, n_head),
        out_shape=jax.ShapeDtypeStruct((B, T, C), x.dtype),
        grid_spec=pltpu.PrefetchScalarGridSpec(
            num_scalar_prefetch=0,
            grid=(B,),                       # maps 1 batch per TC on v7x
            in_specs=in_specs,
            out_specs=pl.BlockSpec((1, T, C), lambda b: (b, 0, 0)),
        ),
        compiler_params=pltpu.CompilerParams(
            dimension_semantics=("parallel",),
            vmem_limit_bytes=32 * 1024 * 1024,
        ),
    )(x, *weight_args)


def block_reference(x, params, n_head):
    """Pure-JAX f32 reference mirroring the PyTorch Block.forward."""
    (ln1g, ln1b, wqkv, bqkv, wo, bo, ln2g, ln2b, wfc, bfc, wp, bp) = params
    B, T, C = x.shape
    hd = C // n_head

    def ln(h, g, b):
        mu = jnp.mean(h, axis=-1, keepdims=True)
        var = jnp.mean((h - mu) ** 2, axis=-1, keepdims=True)
        return (h - mu) * lax.rsqrt(var + 1e-5) * g + b

    h = ln(x, ln1g[0], ln1b[0])
    qkv = h @ wqkv + bqkv[0]
    q, k, v = jnp.split(qkv, 3, axis=-1)
    q = q.reshape(B, T, n_head, hd).transpose(0, 2, 1, 3)
    k = k.reshape(B, T, n_head, hd).transpose(0, 2, 1, 3)
    v = v.reshape(B, T, n_head, hd).transpose(0, 2, 1, 3)
    s = jnp.einsum('bhtd,bhsd->bhts', q, k) / math.sqrt(hd)
    mask = jnp.tril(jnp.ones((T, T), dtype=bool))
    s = jnp.where(mask[None, None], s, -1e30)
    p = jax.nn.softmax(s, axis=-1)
    y = jnp.einsum('bhts,bhsd->bhtd', p, v)
    y = y.transpose(0, 2, 1, 3).reshape(B, T, C)
    x = x + (y @ wo + bo[0])

    h2 = ln(x, ln2g[0], ln2b[0])
    f = h2 @ wfc + bfc[0]
    g = _gelu_tanh(f)
    x = x + (g @ wp + bp[0])
    return x


def init_params(key, n_embd):
    C = n_embd
    ks = jax.random.split(key, 8)
    std = 0.02
    ln1g = jnp.ones((1, C), jnp.float32)
    ln1b = jnp.zeros((1, C), jnp.float32)
    ln2g = jnp.ones((1, C), jnp.float32)
    ln2b = jnp.zeros((1, C), jnp.float32)
    wqkv = std * jax.random.normal(ks[0], (C, 3 * C), jnp.float32)
    bqkv = std * jax.random.normal(ks[1], (1, 3 * C), jnp.float32)
    wo = std * jax.random.normal(ks[2], (C, C), jnp.float32)
    bo = std * jax.random.normal(ks[3], (1, C), jnp.float32)
    wfc = std * jax.random.normal(ks[4], (C, 4 * C), jnp.float32)
    bfc = std * jax.random.normal(ks[5], (1, 4 * C), jnp.float32)
    wp = std * jax.random.normal(ks[6], (4 * C, C), jnp.float32)
    bp = std * jax.random.normal(ks[7], (1, C), jnp.float32)
    return (ln1g, ln1b, wqkv, bqkv, wo, bo, ln2g, ln2b, wfc, bfc, wp, bp)


if __name__ == "__main__":
    # config: block_size=8 (== T), n_embd=32, n_head=4, batch=2
    B, T, C, n_head = 2, 8, 32, 4

    key = jax.random.PRNGKey(0)
    kx, kp = jax.random.split(key)
    x = jax.random.normal(kx, (B, T, C), jnp.float32)
    params = init_params(kp, C)

    out = block_forward(x, params, n_head)
    out = jax.block_until_ready(out)

    ref = block_reference(x, params, n_head)
    ref = jax.block_until_ready(ref)

    err = float(jnp.max(jnp.abs(out - ref)))
    assert out.shape == (B, T, C)
    assert not bool(jnp.any(jnp.isnan(out)))
    assert err < 5e-2, f"max abs error {err}"
    print("KERNEL_OK")
</pallas_src>

<mosaic_0001>
module attributes {stable_mosaic.version = 11 : i64} {
  func.func @block_kernel(%arg0: i32, %arg1: memref<1x8x32xf32, #tpu.memory_space<vmem>>, %arg2: memref<1x32xf32, #tpu.memory_space<vmem>>, %arg3: memref<1x32xf32, #tpu.memory_space<vmem>>, %arg4: memref<32x96xbf16, #tpu.memory_space<vmem>>, %arg5: memref<1x96xf32, #tpu.memory_space<vmem>>, %arg6: memref<32x32xbf16, #tpu.memory_space<vmem>>, %arg7: memref<1x32xf32, #tpu.memory_space<vmem>>, %arg8: memref<1x32xf32, #tpu.memory_space<vmem>>, %arg9: memref<1x32xf32, #tpu.memory_space<vmem>>, %arg10: memref<32x128xbf16, #tpu.memory_space<vmem>>, %arg11: memref<1x128xf32, #tpu.memory_space<vmem>>, %arg12: memref<128x32xbf16, #tpu.memory_space<vmem>>, %arg13: memref<1x32xf32, #tpu.memory_space<vmem>>, %arg14: memref<1x8x32xf32, #tpu.memory_space<vmem>>) attributes {dimension_semantics = [#tpu.dimension_semantics<parallel>], iteration_bounds = array<i64: 2>, scalar_prefetch = 0 : i64, scratch_operands = 0 : i64, tpu.core_type = #tpu.core_type<tc>, window_params = [{transform_indices = @transform_0, window_bounds = array<i64: 1, 8, 32>}, {pipeline_mode = #tpu.pipeline_mode<synchronous>, transform_indices = @transform_1, window_bounds = array<i64: 1, 32>}, {pipeline_mode = #tpu.pipeline_mode<synchronous>, transform_indices = @transform_2, window_bounds = array<i64: 1, 32>}, {pipeline_mode = #tpu.pipeline_mode<synchronous>, transform_indices = @transform_3, window_bounds = array<i64: 32, 96>}, {pipeline_mode = #tpu.pipeline_mode<synchronous>, transform_indices = @transform_4, window_bounds = array<i64: 1, 96>}, {pipeline_mode = #tpu.pipeline_mode<synchronous>, transform_indices = @transform_5, window_bounds = array<i64: 32, 32>}, {pipeline_mode = #tpu.pipeline_mode<synchronous>, transform_indices = @transform_6, window_bounds = array<i64: 1, 32>}, {pipeline_mode = #tpu.pipeline_mode<synchronous>, transform_indices = @transform_7, window_bounds = array<i64: 1, 32>}, {pipeline_mode = #tpu.pipeline_mode<synchronous>, transform_indices = @transform_8, window_bounds = array<i64: 1, 32>}, {pipeline_mode = #tpu.pipeline_mode<synchronous>, transform_indices = @transform_9, window_bounds = array<i64: 32, 128>}, {pipeline_mode = #tpu.pipeline_mode<synchronous>, transform_indices = @transform_10, window_bounds = array<i64: 1, 128>}, {pipeline_mode = #tpu.pipeline_mode<synchronous>, transform_indices = @transform_11, window_bounds = array<i64: 128, 32>}, {pipeline_mode = #tpu.pipeline_mode<synchronous>, transform_indices = @transform_12, window_bounds = array<i64: 1, 32>}, {transform_indices = @transform_13, window_bounds = array<i64: 1, 8, 32>}]} {
    %c0 = arith.constant 0 : index
    %c0_0 = arith.constant 0 : index
    %c0_1 = arith.constant 0 : index
    %0 = vector.load %arg1[%c0, %c0_0, %c0_1] : memref<1x8x32xf32, #tpu.memory_space<vmem>>, vector<1x8x32xf32>
    %1 = vector.shape_cast %0 : vector<1x8x32xf32> to vector<8x32xf32>
    %c0_2 = arith.constant 0 : index
    %c0_3 = arith.constant 0 : index
    %2 = vector.load %arg2[%c0_2, %c0_3] : memref<1x32xf32, #tpu.memory_space<vmem>>, vector<1x32xf32>
    %3 = vector.shape_cast %2 : vector<1x32xf32> to vector<32xf32>
    %c0_4 = arith.constant 0 : index
    %c0_5 = arith.constant 0 : index
    %4 = vector.load %arg3[%c0_4, %c0_5] : memref<1x32xf32, #tpu.memory_space<vmem>>, vector<1x32xf32>
    %5 = vector.shape_cast %4 : vector<1x32xf32> to vector<32xf32>
    %cst = arith.constant dense<0.000000e+00> : vector<8xf32>
    %6 = vector.multi_reduction <add>, %1, %cst [1] : vector<8x32xf32> to vector<8xf32>
    %7 = vector.shape_cast %6 : vector<8xf32> to vector<8x1xf32>
    %cst_6 = arith.constant 3.200000e+01 : f32
    %8 = vector.broadcast %cst_6 : f32 to vector<8x1xf32>
    %9 = arith.divf %7, %8 : vector<8x1xf32>
    %10 = vector.broadcast %9 : vector<8x1xf32> to vector<8x32xf32>
    %11 = arith.subf %1, %10 : vector<8x32xf32>
    %12 = arith.mulf %11, %11 : vector<8x32xf32>
    %cst_7 = arith.constant dense<0.000000e+00> : vector<8xf32>
    %13 = vector.multi_reduction <add>, %12, %cst_7 [1] : vector<8x32xf32> to vector<8xf32>
    %14 = vector.shape_cast %13 : vector<8xf32> to vector<8x1xf32>
    %cst_8 = arith.constant 3.200000e+01 : f32
    %15 = vector.broadcast %cst_8 : f32 to vector<8x1xf32>
    %16 = arith.divf %14, %15 : vector<8x1xf32>
    %17 = vector.broadcast %9 : vector<8x1xf32> to vector<8x32xf32>
    %18 = arith.subf %1, %17 : vector<8x32xf32>
    %cst_9 = arith.constant 9.99999974E-6 : f32
    %19 = vector.broadcast %cst_9 : f32 to vector<8x1xf32>
    %20 = arith.addf %16, %19 : vector<8x1xf32>
    %21 = math.rsqrt %20 : vector<8x1xf32>
    %22 = vector.broadcast %21 : vector<8x1xf32> to vector<8x32xf32>
    %23 = arith.mulf %18, %22 : vector<8x32xf32>
    %24 = vector.shape_cast %3 : vector<32xf32> to vector<1x32xf32>
    %25 = vector.broadcast %24 : vector<1x32xf32> to vector<8x32xf32>
    %26 = arith.mulf %23, %25 : vector<8x32xf32>
    %27 = vector.shape_cast %5 : vector<32xf32> to vector<1x32xf32>
    %28 = vector.broadcast %27 : vector<1x32xf32> to vector<8x32xf32>
    %29 = arith.addf %26, %28 : vector<8x32xf32>
    %30 = arith.truncf %29 : vector<8x32xf32> to vector<8x32xbf16>
    %c0_10 = arith.constant 0 : index
    %c0_11 = arith.constant 0 : index
    %31 = vector.load %arg4[%c0_10, %c0_11] : memref<32x96xbf16, #tpu.memory_space<vmem>>, vector<32x96xbf16>
    %cst_12 = arith.constant dense<0.000000e+00> : vector<8x96xf32>
    %32 = tpu.matmul %30, %31, %cst_12 {dimension_numbers = #tpu.dot_dimension_numbers<[1], [0], [0], [1], [0, 0, 1, 1], [], []>} : vector<8x32xbf16>, vector<32x96xbf16>, vector<8x96xf32> -> vector<8x96xf32>
    %c0_13 = arith.constant 0 : index
    %c0_14 = arith.constant 0 : index
    %33 = vector.load %arg5[%c0_13, %c0_14] : memref<1x96xf32, #tpu.memory_space<vmem>>, vector<1x96xf32>
    %34 = vector.shape_cast %33 : vector<1x96xf32> to vector<96xf32>
    %35 = vector.shape_cast %34 : vector<96xf32> to vector<1x96xf32>
    %36 = vector.broadcast %35 : vector<1x96xf32> to vector<8x96xf32>
    %37 = arith.addf %32, %36 : vector<8x96xf32>
    %38 = tpu.iota {dimensions = array<i32: 0>} : vector<8x8xi32>
    %39 = tpu.iota {dimensions = array<i32: 1>} : vector<8x8xi32>
    %40 = arith.cmpi sge, %38, %39 : vector<8x8xi32>
    %41 = vector.extract_strided_slice %37 {offsets = [0, 0], sizes = [8, 8], strides = [1, 1]} : vector<8x96xf32> to vector<8x8xf32>
    %42 = arith.truncf %41 : vector<8x8xf32> to vector<8x8xbf16>
    %43 = vector.extract_strided_slice %37 {offsets = [0, 32], sizes = [8, 8], strides = [1, 1]} : vector<8x96xf32> to vector<8x8xf32>
    %44 = arith.truncf %43 : vector<8x8xf32> to vector<8x8xbf16>
    %45 = vector.extract_strided_slice %37 {offsets = [0, 64], sizes = [8, 8], strides = [1, 1]} : vector<8x96xf32> to vector<8x8xf32>
    %cst_15 = arith.constant dense<0.000000e+00> : vector<8x8xf32>
    %46 = tpu.matmul %42, %44, %cst_15 {dimension_numbers = #tpu.dot_dimension_numbers<[1], [1], [0], [0], [0, 0, 1, 0], [], []>} : vector<8x8xbf16>, vector<8x8xbf16>, vector<8x8xf32> -> vector<8x8xf32>
    %cst_16 = arith.constant 0.353553385 : f32
    %47 = vector.broadcast %cst_16 : f32 to vector<8x8xf32>
    %48 = arith.mulf %46, %47 : vector<8x8xf32>
    %cst_17 = arith.constant -1.000000e+30 : f32
    %49 = vector.broadcast %cst_17 : f32 to vector<8x8xf32>
    %50 = arith.select %40, %48, %49 : vector<8x8xi1>, vector<8x8xf32>
    %cst_18 = arith.constant dense<0xFF800000> : vector<8xf32>
    %51 = vector.multi_reduction <maximumf>, %50, %cst_18 [1] : vector<8x8xf32> to vector<8xf32>
    %52 = vector.shape_cast %51 : vector<8xf32> to vector<8x1xf32>
    %53 = vector.broadcast %52 : vector<8x1xf32> to vector<8x8xf32>
    %54 = arith.subf %50, %53 : vector<8x8xf32>
    %55 = math.exp %54 : vector<8x8xf32>
    %cst_19 = arith.constant dense<0.000000e+00> : vector<8xf32>
    %56 = vector.multi_reduction <add>, %55, %cst_19 [1] : vector<8x8xf32> to vector<8xf32>
    %57 = vector.shape_cast %56 : vector<8xf32> to vector<8x1xf32>
    %58 = tpu.reciprocal %57 {approx = true} : vector<8x1xf32> -> vector<8x1xf32>
    %59 = vector.broadcast %58 : vector<8x1xf32> to vector<8x8xf32>
    %60 = arith.mulf %55, %59 : vector<8x8xf32>
    %61 = arith.truncf %60 : vector<8x8xf32> to vector<8x8xbf16>
    %62 = arith.truncf %45 : vector<8x8xf32> to vector<8x8xbf16>
    %cst_20 = arith.constant dense<0.000000e+00> : vector<8x8xf32>
    %63 = tpu.matmul %61, %62, %cst_20 {dimension_numbers = #tpu.dot_dimension_numbers<[1], [0], [0], [1], [0, 0, 1, 1], [], []>} : vector<8x8xbf16>, vector<8x8xbf16>, vector<8x8xf32> -> vector<8x8xf32>
    %64 = vector.extract_strided_slice %37 {offsets = [0, 8], sizes = [8, 8], strides = [1, 1]} : vector<8x96xf32> to vector<8x8xf32>
    %65 = arith.truncf %64 : vector<8x8xf32> to vector<8x8xbf16>
    %66 = vector.extract_strided_slice %37 {offsets = [0, 40], sizes = [8, 8], strides = [1, 1]} : vector<8x96xf32> to vector<8x8xf32>
    %67 = arith.truncf %66 : vector<8x8xf32> to vector<8x8xbf16>
    %68 = vector.extract_strided_slice %37 {offsets = [0, 72], sizes = [8, 8], strides = [1, 1]} : vector<8x96xf32> to vector<8x8xf32>
    %cst_21 = arith.constant dense<0.000000e+00> : vector<8x8xf32>
    %69 = tpu.matmul %65, %67, %cst_21 {dimension_numbers = #tpu.dot_dimension_numbers<[1], [1], [0], [0], [0, 0, 1, 0], [], []>} : vector<8x8xbf16>, vector<8x8xbf16>, vector<8x8xf32> -> vector<8x8xf32>
    %cst_22 = arith.constant 0.353553385 : f32
    %70 = vector.broadcast %cst_22 : f32 to vector<8x8xf32>
    %71 = arith.mulf %69, %70 : vector<8x8xf32>
    %cst_23 = arith.constant -1.000000e+30 : f32
    %72 = vector.broadcast %cst_23 : f32 to vector<8x8xf32>
    %73 = arith.select %40, %71, %72 : vector<8x8xi1>, vector<8x8xf32>
    %cst_24 = arith.constant dense<0xFF800000> : vector<8xf32>
    %74 = vector.multi_reduction <maximumf>, %73, %cst_24 [1] : vector<8x8xf32> to vector<8xf32>
    %75 = vector.shape_cast %74 : vector<8xf32> to vector<8x1xf32>
    %76 = vector.broadcast %75 : vector<8x1xf32> to vector<8x8xf32>
    %77 = arith.subf %73, %76 : vector<8x8xf32>
    %78 = math.exp %77 : vector<8x8xf32>
    %cst_25 = arith.constant dense<0.000000e+00> : vector<8xf32>
    %79 = vector.multi_reduction <add>, %78, %cst_25 [1] : vector<8x8xf32> to vector<8xf32>
    %80 = vector.shape_cast %79 : vector<8xf32> to vector<8x1xf32>
    %81 = tpu.reciprocal %80 {approx = true} : vector<8x1xf32> -> vector<8x1xf32>
    %82 = vector.broadcast %81 : vector<8x1xf32> to vector<8x8xf32>
    %83 = arith.mulf %78, %82 : vector<8x8xf32>
    %84 = arith.truncf %83 : vector<8x8xf32> to vector<8x8xbf16>
    %85 = arith.truncf %68 : vector<8x8xf32> to vector<8x8xbf16>
    %cst_26 = arith.constant dense<0.000000e+00> : vector<8x8xf32>
    %86 = tpu.matmul %84, %85, %cst_26 {dimension_numbers = #tpu.dot_dimension_numbers<[1], [0], [0], [1], [0, 0, 1, 1], [], []>} : vector<8x8xbf16>, vector<8x8xbf16>, vector<8x8xf32> -> vector<8x8xf32>
    %87 = vector.extract_strided_slice %37 {offsets = [0, 16], sizes = [8, 8], strides = [1, 1]} : vector<8x96xf32> to vector<8x8xf32>
    %88 = arith.truncf %87 : vector<8x8xf32> to vector<8x8xbf16>
    %89 = vector.extract_strided_slice %37 {offsets = [0, 48], sizes = [8, 8], strides = [1, 1]} : vector<8x96xf32> to vector<8x8xf32>
    %90 = arith.truncf %89 : vector<8x8xf32> to vector<8x8xbf16>
    %91 = vector.extract_strided_slice %37 {offsets = [0, 80], sizes = [8, 8], strides = [1, 1]} : vector<8x96xf32> to vector<8x8xf32>
    %cst_27 = arith.constant dense<0.000000e+00> : vector<8x8xf32>
    %92 = tpu.matmul %88, %90, %cst_27 {dimension_numbers = #tpu.dot_dimension_numbers<[1], [1], [0], [0], [0, 0, 1, 0], [], []>} : vector<8x8xbf16>, vector<8x8xbf16>, vector<8x8xf32> -> vector<8x8xf32>
    %cst_28 = arith.constant 0.353553385 : f32
    %93 = vector.broadcast %cst_28 : f32 to vector<8x8xf32>
    %94 = arith.mulf %92, %93 : vector<8x8xf32>
    %cst_29 = arith.constant -1.000000e+30 : f32
    %95 = vector.broadcast %cst_29 : f32 to vector<8x8xf32>
    %96 = arith.select %40, %94, %95 : vector<8x8xi1>, vector<8x8xf32>
    %cst_30 = arith.constant dense<0xFF800000> : vector<8xf32>
    %97 = vector.multi_reduction <maximumf>, %96, %cst_30 [1] : vector<8x8xf32> to vector<8xf32>
    %98 = vector.shape_cast %97 : vector<8xf32> to vector<8x1xf32>
    %99 = vector.broadcast %98 : vector<8x1xf32> to vector<8x8xf32>
    %100 = arith.subf %96, %99 : vector<8x8xf32>
    %101 = math.exp %100 : vector<8x8xf32>
    %cst_31 = arith.constant dense<0.000000e+00> : vector<8xf32>
    %102 = vector.multi_reduction <add>, %101, %cst_31 [1] : vector<8x8xf32> to vector<8xf32>
    %103 = vector.shape_cast %102 : vector<8xf32> to vector<8x1xf32>
    %104 = tpu.reciprocal %103 {approx = true} : vector<8x1xf32> -> vector<8x1xf32>
    %105 = vector.broadcast %104 : vector<8x1xf32> to vector<8x8xf32>
    %106 = arith.mulf %101, %105 : vector<8x8xf32>
    %107 = arith.truncf %106 : vector<8x8xf32> to vector<8x8xbf16>
    %108 = arith.truncf %91 : vector<8x8xf32> to vector<8x8xbf16>
    %cst_32 = arith.constant dense<0.000000e+00> : vector<8x8xf32>
    %109 = tpu.matmul %107, %108, %cst_32 {dimension_numbers = #tpu.dot_dimension_numbers<[1], [0], [0], [1], [0, 0, 1, 1], [], []>} : vector<8x8xbf16>, vector<8x8xbf16>, vector<8x8xf32> -> vector<8x8xf32>
    %110 = vector.extract_strided_slice %37 {offsets = [0, 24], sizes = [8, 8], strides = [1, 1]} : vector<8x96xf32> to vector<8x8xf32>
    %111 = arith.truncf %110 : vector<8x8xf32> to vector<8x8xbf16>
    %112 = vector.extract_strided_slice %37 {offsets = [0, 56], sizes = [8, 8], strides = [1, 1]} : vector<8x96xf32> to vector<8x8xf32>
    %113 = arith.truncf %112 : vector<8x8xf32> to vector<8x8xbf16>
    %114 = vector.extract_strided_slice %37 {offsets = [0, 88], sizes = [8, 8], strides = [1, 1]} : vector<8x96xf32> to vector<8x8xf32>
    %cst_33 = arith.constant dense<0.000000e+00> : vector<8x8xf32>
    %115 = tpu.matmul %111, %113, %cst_33 {dimension_numbers = #tpu.dot_dimension_numbers<[1], [1], [0], [0], [0, 0, 1, 0], [], []>} : vector<8x8xbf16>, vector<8x8xbf16>, vector<8x8xf32> -> vector<8x8xf32>
    %cst_34 = arith.constant 0.353553385 : f32
    %116 = vector.broadcast %cst_34 : f32 to vector<8x8xf32>
    %117 = arith.mulf %115, %116 : vector<8x8xf32>
    %cst_35 = arith.constant -1.000000e+30 : f32
    %118 = vector.broadcast %cst_35 : f32 to vector<8x8xf32>
    %119 = arith.select %40, %117, %118 : vector<8x8xi1>, vector<8x8xf32>
    %cst_36 = arith.constant dense<0xFF800000> : vector<8xf32>
    %120 = vector.multi_reduction <maximumf>, %119, %cst_36 [1] : vector<8x8xf32> to vector<8xf32>
    %121 = vector.shape_cast %120 : vector<8xf32> to vector<8x1xf32>
    %122 = vector.broadcast %121 : vector<8x1xf32> to vector<8x8xf32>
    %123 = arith.subf %119, %122 : vector<8x8xf32>
    %124 = math.exp %123 : vector<8x8xf32>
    %cst_37 = arith.constant dense<0.000000e+00> : vector<8xf32>
    %125 = vector.multi_reduction <add>, %124, %cst_37 [1] : vector<8x8xf32> to vector<8xf32>
    %126 = vector.shape_cast %125 : vector<8xf32> to vector<8x1xf32>
    %127 = tpu.reciprocal %126 {approx = true} : vector<8x1xf32> -> vector<8x1xf32>
    %128 = vector.broadcast %127 : vector<8x1xf32> to vector<8x8xf32>
    %129 = arith.mulf %124, %128 : vector<8x8xf32>
    %130 = arith.truncf %129 : vector<8x8xf32> to vector<8x8xbf16>
    %131 = arith.truncf %114 : vector<8x8xf32> to vector<8x8xbf16>
    %cst_38 = arith.constant dense<0.000000e+00> : vector<8x8xf32>
    %132 = tpu.matmul %130, %131, %cst_38 {dimension_numbers = #tpu.dot_dimension_numbers<[1], [0], [0], [1], [0, 0, 1, 1], [], []>} : vector<8x8xbf16>, vector<8x8xbf16>, vector<8x8xf32> -> vector<8x8xf32>
    %133 = tpu.concatenate %63, %86, %109, %132 in 1 : vector<8x8xf32>, vector<8x8xf32>, vector<8x8xf32>, vector<8x8xf32> -> vector<8x32xf32>
    %134 = arith.truncf %133 : vector<8x32xf32> to vector<8x32xbf16>
    %c0_39 = arith.constant 0 : index
    %c0_40 = arith.constant 0 : index
    %135 = vector.load %arg6[%c0_39, %c0_40] : memref<32x32xbf16, #tpu.memory_space<vmem>>, vector<32x32xbf16>
    %cst_41 = arith.constant dense<0.000000e+00> : vector<8x32xf32>
    %136 = tpu.matmul %134, %135, %cst_41 {dimension_numbers = #tpu.dot_dimension_numbers<[1], [0], [0], [1], [0, 0, 1, 1], [], []>} : vector<8x32xbf16>, vector<32x32xbf16>, vector<8x32xf32> -> vector<8x32xf32>
    %c0_42 = arith.constant 0 : index
    %c0_43 = arith.constant 0 : index
    %137 = vector.load %arg7[%c0_42, %c0_43] : memref<1x32xf32, #tpu.memory_space<vmem>>, vector<1x32xf32>
    %138 = vector.shape_cast %137 : vector<1x32xf32> to vector<32xf32>
    %139 = vector.shape_cast %138 : vector<32xf32> to vector<1x32xf32>
    %140 = vector.broadcast %139 : vector<1x32xf32> to vector<8x32xf32>
    %141 = arith.addf %136, %140 : vector<8x32xf32>
    %142 = arith.addf %1, %141 : vector<8x32xf32>
    %c0_44 = arith.constant 0 : index
    %c0_45 = arith.constant 0 : index
    %143 = vector.load %arg8[%c0_44, %c0_45] : memref<1x32xf32, #tpu.memory_space<vmem>>, vector<1x32xf32>
    %144 = vector.shape_cast %143 : vector<1x32xf32> to vector<32xf32>
    %c0_46 = arith.constant 0 : index
    %c0_47 = arith.constant 0 : index
    %145 = vector.load %arg9[%c0_46, %c0_47] : memref<1x32xf32, #tpu.memory_space<vmem>>, vector<1x32xf32>
    %146 = vector.shape_cast %145 : vector<1x32xf32> to vector<32xf32>
    %cst_48 = arith.constant dense<0.000000e+00> : vector<8xf32>
    %147 = vector.multi_reduction <add>, %142, %cst_48 [1] : vector<8x32xf32> to vector<8xf32>
    %148 = vector.shape_cast %147 : vector<8xf32> to vector<8x1xf32>
    %cst_49 = arith.constant 3.200000e+01 : f32
    %149 = vector.broadcast %cst_49 : f32 to vector<8x1xf32>
    %150 = arith.divf %148, %149 : vector<8x1xf32>
    %151 = vector.broadcast %150 : vector<8x1xf32> to vector<8x32xf32>
    %152 = arith.subf %142, %151 : vector<8x32xf32>
    %153 = arith.mulf %152, %152 : vector<8x32xf32>
    %cst_50 = arith.constant dense<0.000000e+00> : vector<8xf32>
    %154 = vector.multi_reduction <add>, %153, %cst_50 [1] : vector<8x32xf32> to vector<8xf32>
    %155 = vector.shape_cast %154 : vector<8xf32> to vector<8x1xf32>
    %cst_51 = arith.constant 3.200000e+01 : f32
    %156 = vector.broadcast %cst_51 : f32 to vector<8x1xf32>
    %157 = arith.divf %155, %156 : vector<8x1xf32>
    %158 = vector.broadcast %150 : vector<8x1xf32> to vector<8x32xf32>
    %159 = arith.subf %142, %158 : vector<8x32xf32>
    %cst_52 = arith.constant 9.99999974E-6 : f32
    %160 = vector.broadcast %cst_52 : f32 to vector<8x1xf32>
    %161 = arith.addf %157, %160 : vector<8x1xf32>
    %162 = math.rsqrt %161 : vector<8x1xf32>
    %163 = vector.broadcast %162 : vector<8x1xf32> to vector<8x32xf32>
    %164 = arith.mulf %159, %163 : vector<8x32xf32>
    %165 = vector.shape_cast %144 : vector<32xf32> to vector<1x32xf32>
    %166 = vector.broadcast %165 : vector<1x32xf32> to vector<8x32xf32>
    %167 = arith.mulf %164, %166 : vector<8x32xf32>
    %168 = vector.shape_cast %146 : vector<32xf32> to vector<1x32xf32>
    %169 = vector.broadcast %168 : vector<1x32xf32> to vector<8x32xf32>
    %170 = arith.addf %167, %169 : vector<8x32xf32>
    %171 = arith.truncf %170 : vector<8x32xf32> to vector<8x32xbf16>
    %c0_53 = arith.constant 0 : index
    %c0_54 = arith.constant 0 : index
    %172 = vector.load %arg10[%c0_53, %c0_54] : memref<32x128xbf16, #tpu.memory_space<vmem>>, vector<32x128xbf16>
    %cst_55 = arith.constant dense<0.000000e+00> : vector<8x128xf32>
    %173 = tpu.matmul %171, %172, %cst_55 {dimension_numbers = #tpu.dot_dimension_numbers<[1], [0], [0], [1], [0, 0, 1, 1], [], []>} : vector<8x32xbf16>, vector<32x128xbf16>, vector<8x128xf32> -> vector<8x128xf32>
    %c0_56 = arith.constant 0 : index
    %c0_57 = arith.constant 0 : index
    %174 = vector.load %arg11[%c0_56, %c0_57] : memref<1x128xf32, #tpu.memory_space<vmem>>, vector<1x128xf32>
    %175 = vector.shape_cast %174 : vector<1x128xf32> to vector<128xf32>
    %176 = vector.shape_cast %175 : vector<128xf32> to vector<1x128xf32>
    %177 = vector.broadcast %176 : vector<1x128xf32> to vector<8x128xf32>
    %178 = arith.addf %173, %177 : vector<8x128xf32>
    %cst_58 = arith.constant 5.000000e-01 : f32
    %179 = vector.broadcast %cst_58 : f32 to vector<8x128xf32>
    %180 = arith.mulf %179, %178 : vector<8x128xf32>
    %cst_59 = arith.constant 4.471500e-02 : f32
    %181 = vector.broadcast %cst_59 : f32 to vector<8x128xf32>
    %182 = arith.mulf %181, %178 : vector<8x128xf32>
    %183 = arith.mulf %182, %178 : vector<8x128xf32>
    %184 = arith.mulf %183, %178 : vector<8x128xf32>
    %185 = arith.addf %178, %184 : vector<8x128xf32>
    %cst_60 = arith.constant 0.797884583 : f32
    %186 = vector.broadcast %cst_60 : f32 to vector<8x128xf32>
    %187 = arith.mulf %186, %185 : vector<8x128xf32>
    %188 = math.tanh %187 : vector<8x128xf32>
    %cst_61 = arith.constant 1.000000e+00 : f32
    %189 = vector.broadcast %cst_61 : f32 to vector<8x128xf32>
    %190 = arith.addf %189, %188 : vector<8x128xf32>
    %191 = arith.mulf %180, %190 : vector<8x128xf32>
    %192 = arith.truncf %191 : vector<8x128xf32> to vector<8x128xbf16>
    %c0_62 = arith.constant 0 : index
    %c0_63 = arith.constant 0 : index
    %193 = vector.load %arg12[%c0_62, %c0_63] : memref<128x32xbf16, #tpu.memory_space<vmem>>, vector<128x32xbf16>
    %cst_64 = arith.constant dense<0.000000e+00> : vector<8x32xf32>
    %194 = tpu.matmul %192, %193, %cst_64 {dimension_numbers = #tpu.dot_dimension_numbers<[1], [0], [0], [1], [0, 0, 1, 1], [], []>} : vector<8x128xbf16>, vector<128x32xbf16>, vector<8x32xf32> -> vector<8x32xf32>
    %c0_65 = arith.constant 0 : index
    %c0_66 = arith.constant 0 : index
    %195 = vector.load %arg13[%c0_65, %c0_66] : memref<1x32xf32, #tpu.memory_space<vmem>>, vector<1x32xf32>
    %196 = vector.shape_cast %195 : vector<1x32xf32> to vector<32xf32>
    %197 = vector.shape_cast %196 : vector<32xf32> to vector<1x32xf32>
    %198 = vector.broadcast %197 : vector<1x32xf32> to vector<8x32xf32>
    %199 = arith.addf %194, %198 : vector<8x32xf32>
    %200 = arith.addf %142, %199 : vector<8x32xf32>
    %c0_67 = arith.constant 0 : index
    %c0_68 = arith.constant 0 : index
    %c0_69 = arith.constant 0 : index
    %201 = vector.load %arg14[%c0_67, %c0_68, %c0_69] : memref<1x8x32xf32, #tpu.memory_space<vmem>>, vector<1x8x32xf32>
    %202 = vector.shape_cast %201 : vector<1x8x32xf32> to vector<8x32xf32>
    %203 = vector.shape_cast %200 : vector<8x32xf32> to vector<1x8x32xf32>
    tpu.vector_store %arg14[%c0_67, %c0_68, %c0_69], %203 {strides = array<i32>} : memref<1x8x32xf32, #tpu.memory_space<vmem>>, vector<1x8x32xf32>,
    return
  }
  func.func @transform_0(%arg0: i32) -> (i32, i32, i32) {
    %c0_i32 = arith.constant 0 : i32
    %c0_i32_0 = arith.constant 0 : i32
    %c0_i32_1 = arith.constant 0 : i32
    return %arg0, %c0_i32, %c0_i32_0 : i32, i32, i32
  }
  func.func @transform_1(%arg0: i32) -> (i32, i32) {
    %c0_i32 = arith.constant 0 : i32
    %c0_i32_0 = arith.constant 0 : i32
    %c0_i32_1 = arith.constant 0 : i32
    return %c0_i32, %c0_i32_0 : i32, i32
  }
  func.func @transform_2(%arg0: i32) -> (i32, i32) {
    %c0_i32 = arith.constant 0 : i32
    %c0_i32_0 = arith.constant 0 : i32
    %c0_i32_1 = arith.constant 0 : i32
    return %c0_i32, %c0_i32_0 : i32, i32
  }
  func.func @transform_3(%arg0: i32) -> (i32, i32) {
    %c0_i32 = arith.constant 0 : i32
    %c0_i32_0 = arith.constant 0 : i32
    %c0_i32_1 = arith.constant 0 : i32
    return %c0_i32, %c0_i32_0 : i32, i32
  }
  func.func @transform_4(%arg0: i32) -> (i32, i32) {
    %c0_i32 = arith.constant 0 : i32
    %c0_i32_0 = arith.constant 0 : i32
    %c0_i32_1 = arith.constant 0 : i32
    return %c0_i32, %c0_i32_0 : i32, i32
  }
  func.func @transform_5(%arg0: i32) -> (i32, i32) {
    %c0_i32 = arith.constant 0 : i32
    %c0_i32_0 = arith.constant 0 : i32
    %c0_i32_1 = arith.constant 0 : i32
    return %c0_i32, %c0_i32_0 : i32, i32
  }
  func.func @transform_6(%arg0: i32) -> (i32, i32) {
    %c0_i32 = arith.constant 0 : i32
    %c0_i32_0 = arith.constant 0 : i32
    %c0_i32_1 = arith.constant 0 : i32
    return %c0_i32, %c0_i32_0 : i32, i32
  }
  func.func @transform_7(%arg0: i32) -> (i32, i32) {
    %c0_i32 = arith.constant 0 : i32
    %c0_i32_0 = arith.constant 0 : i32
    %c0_i32_1 = arith.constant 0 : i32
    return %c0_i32, %c0_i32_0 : i32, i32
  }
  func.func @transform_8(%arg0: i32) -> (i32, i32) {
    %c0_i32 = arith.constant 0 : i32
    %c0_i32_0 = arith.constant 0 : i32
    %c0_i32_1 = arith.constant 0 : i32
    return %c0_i32, %c0_i32_0 : i32, i32
  }
  func.func @transform_9(%arg0: i32) -> (i32, i32) {
    %c0_i32 = arith.constant 0 : i32
    %c0_i32_0 = arith.constant 0 : i32
    %c0_i32_1 = arith.constant 0 : i32
    return %c0_i32, %c0_i32_0 : i32, i32
  }
  func.func @transform_10(%arg0: i32) -> (i32, i32) {
    %c0_i32 = arith.constant 0 : i32
    %c0_i32_0 = arith.constant 0 : i32
    %c0_i32_1 = arith.constant 0 : i32
    return %c0_i32, %c0_i32_0 : i32, i32
  }
  func.func @transform_11(%arg0: i32) -> (i32, i32) {
    %c0_i32 = arith.constant 0 : i32
    %c0_i32_0 = arith.constant 0 : i32
    %c0_i32_1 = arith.constant 0 : i32
    return %c0_i32, %c0_i32_0 : i32, i32
  }
  func.func @transform_12(%arg0: i32) -> (i32, i32) {
    %c0_i32 = arith.constant 0 : i32
    %c0_i32_0 = arith.constant 0 : i32
    %c0_i32_1 = arith.constant 0 : i32
    return %c0_i32, %c0_i32_0 : i32, i32
  }
  func.func @transform_13(%arg0: i32) -> (i32, i32, i32) {
    %c0_i32 = arith.constant 0 : i32
    %c0_i32_0 = arith.constant 0 : i32
    %c0_i32_1 = arith.constant 0 : i32
    return %arg0, %c0_i32, %c0_i32_0 : i32, i32, i32
  }
}

</mosaic_0001>

<bundles_post_ra>
// kernel: tpu_custom_call.1
= control target key start
LH: loop header
LB: loop body
LE: loop exit
PB: predicated region body
PF: predicated region fallthrough
CT: control target
= control target key end

     0   :  { %s2052_s0 = inlined_call_operand.vmem [shape: f32[2,8,32], index: 0, kind: input, shape index: {}]   ;;  %s2053_s1 = inlined_call_operand.vmem [shape: f32[1,32], index: 1, kind: input, shape index: {}]   ;;  %s2054_s2 = inlined_call_operand.vmem [shape: f32[1,32], index: 2, kind: input, shape index: {}]   ;;  %s2055_s3 = inlined_call_operand.vmem [shape: bf16[32,96], index: 3, kind: input, shape index: {}]   ;;  %s2056_s4 = inlined_call_operand.vmem [shape: f32[1,96], index: 4, kind: input, shape index: {}]   ;;  %s2057_s5 = inlined_call_operand.vmem [shape: bf16[32,32], index: 5, kind: input, shape index: {}]   ;;  %s2058_s6 = inlined_call_operand.vmem [shape: f32[1,32], index: 6, kind: input, shape index: {}]   ;;  %s2059_s7 = inlined_call_operand.vmem [shape: f32[1,32], index: 7, kind: input, shape index: {}]   ;;  %s2060_s8 = inlined_call_operand.vmem [shape: f32[1,32], index: 8, kind: input, shape index: {}]   ;;  %s2061_s9 = inlined_call_operand.vmem [shape: bf16[32,128], index: 9, kind: input, shape index: {}]   ;;  %s2062_s10 = inlined_call_operand.vmem [shape: f32[1,128], index: 10, kind: input, shape index: {}]   ;;  %s2063_s11 = inlined_call_operand.vmem [shape: bf16[128,32], index: 11, kind: input, shape index: {}]   ;;  %s2064_s12 = inlined_call_operand.vmem [shape: f32[1,32], index: 12, kind: input, shape index: {}]   ;;  %s2065_s13 = inlined_call_operand.hbm [shape: f32[2,8,32], index: 13, kind: output, shape index: {}]  }
   0x1   :  { %2066 = sst [smem:[#allocation5_spill]] %s2052_s0 }
   0x2   :  { %2067 = sst [smem:[#allocation6_spill]] %s2053_s1 }
   0x3   :  { %2068 = sst [smem:[#allocation7_spill]] %s2054_s2 }
   0x4   :  { %18 = vsyncpa [#allocation3], 0 }
   0x5   :  { %20 = vsyncpa [#allocation3 + $0x1], 0  ;;  %s1779_s25 = smov 0   ;;  %s1781_s26 = smov 0  }
   0x6   :  { %s1783_s27 = smov 0   ;;  %s1785_s28 = smov 0  }
   0x7 LB: > { %s1800_s29 = sadd.s32 4294967295, %s1690_s28   ;;  %s1368_s30 = sadd.s32 4294967294, %s1690_s28   ;;  %s1690_s28 = sphi %s1785_s28, %s2077_s28   ;;  %s1686_s27 = sphi %s1783_s27, %s2076_s27   ;;  %s1682_s26 = sphi %s1781_s26, %s2075_s26   ;;  %s1678_s25 = sphi %s1779_s25, %s2074_s25  }
   0x8   : > { %s1804_s14 = sadd.s32 1, %s1690_s28   ;;  %s311_s15 = sadd.s32 1, %s1686_s27 }
   0x9   : > { %s308_s16 = ssub.s32 %s1690_s28, %s1804_s14  ;;  %p321_p0 = scmp.ne.s32.totalorder %s1686_s27, %s1682_s26 }
   0xa   : > { %p309_p1 = scmp.eq.s32.totalorder %s308_s16, 0  ;;  %p322_p2 = scmp.eq.s32.totalorder %s1800_s29, 1 }
   0xb   : > { %p327_p3 = scmp.ne.s32.totalorder %s1682_s26, %s1678_s25  ;;  %p328_p4 = scmp.eq.s32.totalorder %s1368_s30, 1 }
   0xc   : > { %s1815_s17 = scalar_select %p309_p1, %s1686_s27, %s311_s15  }
   0xd   : > { %p1817_p5 = por %p322_p2, %p321_p0  ;;  %p1821_p6 = por %p328_p4, %p327_p3 }
   0xe   : > { %p1371_p7 = scmp.ge.s32.totalorder %s1690_s28, 1  ;;  %p389_p8 = scmp.lt.s32.totalorder %s1690_s28, 3 }
  0x10   : > { %p390_p9 = pnand %p1371_p7, %p389_p8 }
  0x11   : > { %p432_p10 = scmp.lt.s32.totalorder (!%p390_p9), %s1800_s29, 1  ;;  %vm440_vm0 = vcmask (!%p390_p9), 261120   ;;  %s2071_s0 = sld [smem:[#allocation5_spill]] (!%p390_p9)  ;;  %v1592_v7 = vld [vmem:[%s2055_s3] sm:$0xff] (!%p390_p9)   ;;  %v1692_v8 = vmov (!%p390_p9), 0.0   ;;  %vm1693_vm1 = vmmov (!%p390_p9), 0   ;;  %v536_v38 = vlaneseq (!%p390_p9) }
  0x12   : > { %393 = sbr.rel (%p390_p9) target bundleno = 2608 (0xa30), region = 72  ;;  %1445 = vmatprep.subr.bf16.mxu0 (!%p390_p9), %v1692_v8  ;;  %1449 = vmatprep.mubr.msk.bf16.mxu0 (!%p390_p9), %vm1693_vm1, %v1692_v8  ;;  %v1593_v9 = vld [vmem:[%s2055_s3 + $0x8] sm:$0xff] (!%p390_p9)   ;;  %s2072_s1 = sld [smem:[#allocation6_spill]] (!%p390_p9)  ;;  %v1376_v20 = vld [vmem:[%s2056_s4] ss:$0 sm:$0xff] (!%p390_p9)  ;;  %vm545_vm2 = vcmask (!%p390_p9), 64512  }
  0x13   : > { %1446 = vmatpush3.bf16.msra.mxu0 (!%p390_p9), %v1592_v7  ;;  %1465 = vmatprep.subr.bf16.mxu1 (!%p390_p9), %v1692_v8  ;;  %s2073_s2 = sld [smem:[#allocation7_spill]] (!%p390_p9)  ;;  %s1694_s16 = smov (!%p390_p9), 120   ;;  %v537_v39 = vshrl.u32 (!%p390_p9), %v536_v38, 7  ;;  %v539_v40 = vand.u32 (!%p390_p9), 127, %v536_v38  ;;  %vm611_vm4 = vcmask (!%p390_p9), 1043456   ;;  %vm1004_vm5 = vcmask (!%p390_p9), 130048  }
  0x14   : > { %1447 = vmatprep.subr.bf16.mxu0 (!%p390_p9), %v1692_v8  ;;  %1467 = vmatprep.mubr.msk.bf16.mxu1 (!%p390_p9), %vm1693_vm1, %v1692_v8  ;;  %s1697_s22 = smov (!%p390_p9), 80   ;;  %s1698_s23 = smov (!%p390_p9), 112   ;;  %vm1006_vm6 = vcmask (!%p390_p9), 195584  }
  0x15   : > { %s1700_s30 = smov (!%p390_p9), 104   ;;  %vm540_vm3 = vcmp.ge.s32.totalorder (!%p390_p9), %v537_v39, %v539_v40  ;;  %s1701_s15 = smov (!%p390_p9), 64  }
  0x17   : > { %1448 = vmatpush3.bf16.msra.mxu0 (!%p390_p9), %v1593_v9 }
  0x18   : > { %1453 = vmatprep.subr.bf16.mxu0 (!%p390_p9), %v1692_v8  ;;  %v1374_v14 = vld [vmem:[%s2072_s1] ss:$0 sm:$0xff] (!%p390_p9) }
  0x19   : > { %s433_s20 = scalar_select %p432_p10, %s1800_s29, 1  ;;  %v1375_v16 = vld [vmem:[%s2073_s2] ss:$0 sm:$0xff] }
  0x1b   : > { %s1373_s21 = sshll.u32 %s433_s20, 3  ;;  %s1695_s20 = smov 96  }
  0x1c   : > { %s435_s24 = scalar_lea.vmem %s2071_s0, %s1373_s21  ;;  %s1696_s21 = smov 88  }
  0x1d   : > { %v1832_v0 = vld [vmem:[%s435_s24] sm:$0xff]  ;;  %s1699_s24 = smov 72  }
  0x1e   : > { %v441_v1 = vsel %vm440_vm0, %v1832_v0, 0.0 }
  0x1f   : > { %442 = vadd.xlane.f32.xlu0 %v441_v1 }
  0xac   : > { %v443_v2 = vpop.xlane.xlu0 %442 }
  0xad   : > { %v445_v3 = vmul.f32 0.03125, %v443_v2 }
  0xaf   : > { %v446_v4 = vsub.f32 %v1832_v0, %v445_v3 }
  0xb1   : > { %v447_v5 = vmul.f32 %v446_v4, %v446_v4 }
  0xb3   : > { %v448_v6 = vsel %vm440_vm0, %v447_v5, 0.0 }
  0xb4   : > { %449 = vadd.xlane.f32.xlu0 %v448_v6 }
 0x141   : > { %v450_v10 = vpop.xlane.xlu0 %449 }
 0x142   : > { %v451_v11 = vmul.f32 0.03125, %v450_v10 }
 0x144   : > { %v452_v12 = vadd.f32 1e-05, %v451_v11 }
 0x146   : > { %1606 = vrsqrt.f32 %v452_v12 }
 0x150   : > { %v1607_v13 = vpop.eup %1606 }
 0x151   : > { %v454_v15 = vmul.f32 %v1607_v13, %v446_v4 }
 0x153   : > { %v461_v17 = vmul.f32 %v1374_v14, %v454_v15 }
 0x155   : > { %v468_v18 = vadd.f32 %v1375_v16, %v461_v17 }
 0x157   : > { %v469_v19 = vpack.c.bf16 %v468_v18, %v468_v18 }
 0x159   : > { %1450 = vmatmul.mubr.msk.bf16.vlgmr.msra.gmra.mrb[0].mxu0 %vm440_vm0, %v469_v19 }
 0x15a   : > { %1455 = vmatprep.mubr.msk.bf16.mxu0 %vm1693_vm1, %v1692_v8 }
 0x22c   : > { %v530_v21 = vpop.f32.mrb[0].mxu0 }
 0x22d   : > { %v531_v22 = vadd.f32 %v1376_v20, %v530_v21  ;;  %v1451_v23 = vpop.f32.mrb[1].mxu0 }
 0x22e   : > { %v533_v24 = vpop.f32.mrb[2].mxu0 }
 0x22f   : > { %v1864_v25 = vpack.c.bf16 %v531_v22, %v531_v22  ;;  %v1452_v26 = vpop.f32.mrb[3].mxu0 }
 0x231   : > { %655 = vrot.lane.b32.xlu0 %v1864_v25, %s1694_s16  ;;  %543 = vrot.lane.b32.xlu1 %v1864_v25, %s1695_s20  ;;  %s1702_s16 = smov 56   ;;  %s1703_s20 = smov 48  }
 0x235   : > { %657 = vrot.lane.b32.xlu1 %v1864_v25, %s1696_s21  ;;  %s1704_s21 = smov 40  }
 0x239   : > { %769 = vrot.lane.b32.xlu1 %v1864_v25, %s1697_s22  ;;  %s1705_s22 = smov 8  }
 0x23d   : > { %767 = vrot.lane.b32.xlu1 %v1864_v25, %s1698_s23 }
 0x241   : > { %881 = vrot.lane.b32.xlu1 %v1864_v25, %s1699_s24 }
 0x245   : > { %879 = vrot.lane.b32.xlu1 %v1864_v25, %s1700_s30  ;;  %s429_s30 = sand.u32 1, %s1682_s26  }
 0x2a3   : > { %v544_v27 = vpop.permute.xlu1 %543  ;;  %v656_v32 = vpop.permute.xlu0 %655 }
 0x2a4   : > { %v550_v28 = vsel %vm545_vm2, %v544_v27, 0 }
 0x2a5   : > { %1454 = vmatpush3.bf16.xpose.msra.mxu0 %v550_v28 }
 0x2a6   : > { %1459 = vmatprep.subr.bf16.mxu0 %v1692_v8 }
 0x2a7   : > { %v658_v29 = vpop.permute.xlu1 %657 }
 0x2a8   : > { %v663_v30 = vsel %vm545_vm2, %v658_v29, 0 }
 0x2a9   : > { %1466 = vmatpush3.bf16.xpose.msra.mxu1 %v663_v30 }
 0x2aa   : > { %1477 = vmatprep.subr.bf16.mxu1 %v1692_v8 }
 0x2ab   : > { %v770_v31 = vpop.permute.xlu1 %769 }
 0x2ac   : > { %1456 = vmatmul.mubr.msk.bf16.vlgmr.msra.gmra.mrb[4].mxu0 %vm545_vm2, %v1864_v25  ;;  %v775_v34 = vsel %vm545_vm2, %v770_v31, 0 }
 0x2ad   : > { %1461 = vmatprep.mubr.msk.bf16.mxu0 %vm1693_vm1, %v1692_v8 }
 0x2af   : > { %v768_v33 = vpop.permute.xlu1 %767 }
 0x2b0   : > { %1468 = vmatmul.mubr.msk.bf16.vlgmr.msra.gmra.mrb[0].mxu1 %vm545_vm2, %v656_v32 }
 0x2b1   : > { %1478 = vmatpush3.bf16.xpose.msra.mxu1 %v775_v34  ;;  %1479 = vmatprep.mubr.msk.bf16.mxu1 %vm1693_vm1, %v1692_v8 }
 0x2b2   : > { %1489 = vmatprep.subr.bf16.mxu1 %v1692_v8 }
 0x2b3   : > { %v882_v35 = vpop.permute.xlu1 %881 }
 0x2b4   : > { %v887_v36 = vsel %vm545_vm2, %v882_v35, 0 }
 0x2b7   : > { %v880_v37 = vpop.permute.xlu1 %879 }
 0x2b8   : > { %1480 = vmatmul.mubr.msk.bf16.vlgmr.msra.gmra.mrb[4].mxu1 %vm545_vm2, %v768_v33 }
 0x2b9   : > { %1490 = vmatpush3.bf16.xpose.msra.mxu1 %v887_v36  ;;  %1491 = vmatprep.mubr.msk.bf16.mxu1 %vm1693_vm1, %v1692_v8 }
 0x2ba   : > { %1501 = vmatprep.subr.bf16.mxu1 %v1692_v8 }
 0x2c0   : > { %1492 = vmatmul.mubr.msk.bf16.vlgmr.msra.gmra.mrb[8].mxu1 %vm545_vm2, %v880_v37 }
 0x2c1   : > { %1505 = vmatprep.mubr.msk.bf16.mxu1 %vm1693_vm1, %v1692_v8 }
 0x37f   : > { %v586_v41 = vpop.f32.mrb[4].mxu0 }
 0x380   : > { %v592_v42 = vmul.f32 0.35355338, %v586_v41  ;;  %v1457_v43 = vpop.f32.mrb[5].mxu0 }
 0x381   : > { %v589_v44 = vpop.f32.mrb[6].mxu0 }
 0x382   : > { %v1458_v45 = vpop.f32.mrb[7].mxu0  ;;  %v593_v46 = vsel %vm540_vm3, %v592_v42, -1e+30 }
 0x383   : > { %v699_v47 = vpop.f32.mrb[0].mxu1  ;;  %v594_v48 = vsel %vm545_vm2, %v593_v46, -inf }
 0x384   : > { %v705_v49 = vmul.f32 0.35355338, %v699_v47  ;;  %v1469_v50 = vpop.f32.mrb[1].mxu1  ;;  %595 = vmax.xlane.f32.xlu1 %v594_v48 }
 0x385   : > { %v702_v51 = vpop.f32.mrb[2].mxu1 }
 0x386   : > { %v1470_v52 = vpop.f32.mrb[3].mxu1  ;;  %v706_v53 = vsel %vm540_vm3, %v705_v49, -1e+30 }
 0x387   : > { %v707_v54 = vsel %vm545_vm2, %v706_v53, -inf }
 0x388   : > { %708 = vmax.xlane.f32.xlu0 %v707_v54 }
 0x38b   : > { %v811_v55 = vpop.f32.mrb[4].mxu1 }
 0x38c   : > { %v817_v56 = vmul.f32 0.35355338, %v811_v55  ;;  %v1481_v57 = vpop.f32.mrb[5].mxu1 }
 0x38d   : > { %v814_v58 = vpop.f32.mrb[6].mxu1 }
 0x38e   : > { %v1482_v59 = vpop.f32.mrb[7].mxu1  ;;  %v818_v60 = vsel %vm540_vm3, %v817_v56, -1e+30 }
 0x38f   : > { %v819_v61 = vsel %vm545_vm2, %v818_v60, -inf  ;;  %v1594_v59 = vld [vmem:[%s2057_s5] sm:$0xff]  }
 0x390   : > { %820 = vmax.xlane.f32.xlu1 %v819_v61  ;;  %1502 = vmatpush3.bf16.msra.mxu1 %v1594_v59 }
 0x391   : > { %1503 = vmatprep.subr.bf16.mxu1 %v1692_v8 }
 0x393   : > { %v923_v62 = vpop.f32.mrb[8].mxu1 }
 0x394   : > { %v929_v63 = vmul.f32 0.35355338, %v923_v62  ;;  %v1493_v1 = vpop.f32.mrb[9].mxu1 }
 0x395   : > { %v926_v2 = vpop.f32.mrb[10].mxu1 }
 0x396   : > { %v1494_v3 = vpop.f32.mrb[11].mxu1  ;;  %v930_v4 = vsel %vm540_vm3, %v929_v63, -1e+30 }
 0x397   : > { %v931_v5 = vsel %vm545_vm2, %v930_v4, -inf }
 0x398   : > { %932 = vmax.xlane.f32.xlu0 %v931_v5 }
 0x411   : > { %v596_v6 = vpop.xlane.xlu1 %595 }
 0x412   : > { %v597_v7 = vsub.f32 %v593_v46, %v596_v6 }
 0x414   : > { %v598_v9 = vmul.f32 1.442695, %v597_v7 }
 0x415   : > { %v709_v10 = vpop.xlane.xlu0 %708 }
 0x416   : > { %1608 = vpow2.f32 %v598_v9  ;;  %v710_v11 = vsub.f32 %v706_v53, %v709_v10 }
 0x418   : > { %v711_v12 = vmul.f32 1.442695, %v710_v11 }
 0x41a   : > { %1610 = vpow2.f32 %v711_v12 }
 0x41d   : > { %v821_v22 = vpop.xlane.xlu1 %820 }
 0x41e   : > { %v822_v23 = vsub.f32 %v818_v60, %v821_v22  ;;  %v1595_v60 = vld [vmem:[%s2057_s5 + $0x8] sm:$0xff]  }
 0x41f   : > { %1504 = vmatpush3.bf16.msra.mxu1 %v1595_v60 }
 0x420   : > { %v1609_v13 = vpop.eup %1608  ;;  %v823_v24 = vmul.f32 1.442695, %v822_v23  ;;  %1517 = vmatprep.subr.bf16.mxu1 %v1692_v8 }
 0x421   : > { %v600_v14 = vsel %vm545_vm2, %v1609_v13, 0.0 }
 0x422   : > { %601 = vadd.xlane.f32.xlu1 %v600_v14  ;;  %v1388_v14 = vld [vmem:[%s2058_s6] ss:$0 sm:$0xff] }
 0x424   : > { %v1611_v15 = vpop.eup %1610 }
 0x425   : > { %v933_v16 = vpop.xlane.xlu0 %932  ;;  %v713_v17 = vsel %vm545_vm2, %v1611_v15, 0.0 }
 0x426   : > { %v934_v18 = vsub.f32 %v930_v4, %v933_v16  ;;  %714 = vadd.xlane.f32.xlu0 %v713_v17 }
 0x428   : > { %v935_v19 = vmul.f32 1.442695, %v934_v18 }
 0x42a   : > { %1612 = vpow2.f32 %v935_v19 }
 0x42b   : > { %1614 = vpow2.f32 %v823_v24 }
 0x433   : > { %606 = vrot.lane.b32.xlu1 %v1864_v25, %s1701_s15  ;;  %s1372_s15 = sshll.u32 %s429_s30, 3 }
 0x434   : > { %v1613_v20 = vpop.eup %1612 }
 0x435   : > { %v937_v21 = vsel %vm545_vm2, %v1613_v20, 0.0  ;;  %v1615_v26 = vpop.eup %1614 }
 0x436   : > { %938 = vadd.xlane.f32.xlu0 %v937_v21  ;;  %v825_v27 = vsel %vm545_vm2, %v1615_v26, 0.0 }
 0x44c   : > { %719 = vrot.lane.b32.xlu0 %v1864_v25, %s1702_s16  ;;  %s1706_s16 = smov 16  }
 0x457   : > { %826 = vadd.xlane.f32.xlu1 %v825_v27 }
 0x468   : > { %831 = vrot.lane.b32.xlu1 %v1864_v25, %s1703_s20  ;;  %s1707_s20 = smov 24  }
 0x46c   : > { %943 = vrot.lane.b32.xlu1 %v1864_v25, %s1704_s21  ;;  %s1408_s21 = sshll.u32 %s1800_s29, 7  ;;  %s1296_s29 = scalar_lea.sflag [#allocation3], %s429_s30 }
 0x46d   : > { %s2009_s1 = scalar_lea.hbm %s2065_s13, %s1408_s21 }
 0x4af   : > { %v602_v28 = vpop.xlane.xlu1 %601 }
 0x4b0   : > { %1616 = vrcp.f32 %v602_v28  ;;  %v1596_v28 = vld [vmem:[%s2061_s9] sm:$0xff]  }
 0x4b3   : > { %v607_v29 = vpop.permute.xlu1 %606  ;;  %v715_v31 = vpop.xlane.xlu0 %714 }
 0x4b4   : > { %v613_v30 = vsel %vm611_vm4, %v607_v29, 0  ;;  %1618 = vrcp.f32 %v715_v31  ;;  %v1598_v29 = vld [vmem:[%s2063_s11] sm:$0xff]  }
 0x4b5   : > { %1460 = vmatpush3.bf16.msra.mxu0 %v613_v30 }
 0x4b6   : > { %1471 = vmatprep.subr.bf16.mxu0 %v1692_v8 }
 0x4ba   : > { %v1617_v32 = vpop.eup %1616 }
 0x4bb   : > { %v604_v33 = vmul.f32 %v1617_v32, %v1609_v13 }
 0x4bd   : > { %v605_v34 = vpack.c.bf16 %v604_v33, %v604_v33 }
 0x4be   : > { %v1619_v25 = vpop.eup %1618 }
 0x4bf   : > { %1462 = vmatmul.mubr.msk.bf16.vlgmr.msra.gmra.mrb[8].mxu0 %vm545_vm2, %v605_v34  ;;  %v717_v36 = vmul.f32 %v1619_v25, %v1611_v15  ;;  %v1392_v34 = vld [vmem:[%s2059_s7] ss:$0 sm:$0xff] }
 0x4c0   : > { %1473 = vmatprep.mubr.msk.bf16.mxu0 %vm1693_vm1, %v1692_v8 }
 0x4c1   : > { %v718_v39 = vpack.c.bf16 %v717_v36, %v717_v36 }
 0x4c3   : > { %v939_v35 = vpop.xlane.xlu0 %938 }
 0x4c7   : > { %v720_v37 = vpop.permute.xlu0 %719 }
 0x4c8   : > { %v725_v38 = vsel %vm611_vm4, %v720_v37, 0 }
 0x4c9   : > { %1472 = vmatpush3.bf16.msra.mxu0 %v725_v38 }
 0x4ca   : > { %1483 = vmatprep.subr.bf16.mxu0 %v1692_v8 }
 0x4cc   : > { %1474 = vmatmul.mubr.msk.bf16.vlgmr.msra.gmra.mrb[12].mxu0 %vm545_vm2, %v718_v39  ;;  %v1599_v39 = vld [vmem:[%s2063_s11 + $0x8] sm:$0xff]  }
 0x4cd   : > { %1485 = vmatprep.mubr.msk.bf16.mxu0 %vm1693_vm1, %v1692_v8 }
 0x4e4   : > { %v827_v40 = vpop.xlane.xlu1 %826 }
 0x4e5   : > { %1620 = vrcp.f32 %v827_v40  ;;  %v1600_v40 = vld [vmem:[%s2063_s11 + $0x10] sm:$0xff]  }
 0x4e6   : > { %1622 = vrcp.f32 %v939_v35  ;;  %v1393_v35 = vld [vmem:[%s2060_s8] ss:$0 sm:$0xff] }
 0x4e8   : > { %v832_v41 = vpop.permute.xlu1 %831 }
 0x4e9   : > { %v837_v42 = vsel %vm611_vm4, %v832_v41, 0  ;;  %v1601_v41 = vld [vmem:[%s2063_s11 + $0x18] sm:$0xff]  }
 0x4ea   : > { %1484 = vmatpush3.bf16.msra.mxu0 %v837_v42  ;;  %v1602_v42 = vld [vmem:[%s2063_s11 + $0x20] sm:$0xff]  }
 0x4eb   : > { %1495 = vmatprep.subr.bf16.mxu0 %v1692_v8 }
 0x4ec   : > { %v944_v45 = vpop.permute.xlu1 %943 }
 0x4ed   : > { %v949_v48 = vsel %vm611_vm4, %v944_v45, 0  ;;  %v1605_v45 = vld [vmem:[%s2063_s11 + $0x38] sm:$0xff]  }
 0x4ef   : > { %v1621_v43 = vpop.eup %1620 }
 0x4f0   : > { %v829_v44 = vmul.f32 %v1621_v43, %v1615_v26  ;;  %v1623_v47 = vpop.eup %1622  ;;  %v1603_v43 = vld [vmem:[%s2063_s11 + $0x28] sm:$0xff]  }
 0x4f1   : > { %v941_v49 = vmul.f32 %v1623_v47, %v1613_v20 }
 0x4f2   : > { %v830_v46 = vpack.c.bf16 %v829_v44, %v829_v44  ;;  %v1604_v44 = vld [vmem:[%s2063_s11 + $0x30] sm:$0xff]  }
 0x4f3   : > { %v942_v50 = vpack.c.bf16 %v941_v49, %v941_v49 }
 0x4f4   : > { %1486 = vmatmul.mubr.msk.bf16.vlgmr.msra.gmra.mrb[16].mxu0 %vm545_vm2, %v830_v46  ;;  %v1394_v46 = vld [vmem:[%s2062_s10] ss:$0 sm:$0xff] }
 0x4f5   : > { %1496 = vmatpush3.bf16.msra.mxu0 %v949_v48  ;;  %1497 = vmatprep.mubr.msk.bf16.mxu0 %vm1693_vm1, %v1692_v8 }
 0x4f6   : > { %1509 = vmatprep.subr.bf16.mxu0 %v1692_v8 }
 0x4fc   : > { %1498 = vmatmul.mubr.msk.bf16.vlgmr.msra.gmra.mrb[20].mxu0 %vm545_vm2, %v942_v50 }
 0x4fd   : > { %1513 = vmatprep.mubr.msk.bf16.mxu0 %vm1693_vm1, %v1692_v8  ;;  %1510 = vmatpush3.bf16.msra.mxu0 %v1596_v28 }
 0x4fe   : > { %1511 = vmatprep.subr.bf16.mxu0 %v1692_v8 }
 0x592   : > { %v649_v51 = vpop.f32.mrb[8].mxu0 }
 0x593   : > { %v1463_v52 = vpop.f32.mrb[9].mxu0 }
 0x594   : > { %v652_v53 = vpop.f32.mrb[10].mxu0 }
 0x595   : > { %v1464_v54 = vpop.f32.mrb[11].mxu0 }
 0x59f   : > { %v761_v55 = vpop.f32.mrb[12].mxu0 }
 0x5a0   : > { %992 = vrot.lane.b32.xlu0 %v761_v55, %s1705_s22  ;;  %v1475_v56 = vpop.f32.mrb[13].mxu0  ;;  %s431_s22 = scalar_lea.vmem [#allocation2], %s1372_s15 }
 0x5a1   : > { %v764_v57 = vpop.f32.mrb[14].mxu0  ;;  %s1309_s23 = sshll.u32 %s431_s22, 4  ;;  %s2011_s23 = int_to_ptr.vmem [resolvable:$true] %s1309_s23 }
 0x5a2   : > { %v1476_v58 = vpop.f32.mrb[15].mxu0  ;;  %s1628_s15 = scalar_lea.vmem %s2011_s23, 128 }
 0x5a3   : > { %p1629_p11 = scmp.ne.s32.totalorder %s2011_s23, %s1628_s15 }
 0x5a5   : > { %p1630_p12 = pnand %p1629_p11, %p1817_p5 }
 0x5a7   : > { %p1631_p13 = pneg %p1630_p12 }
 0x5c7   : > { %v873_v61 = vpop.f32.mrb[16].mxu0 }
 0x5c8   : > { %996 = vrot.lane.b32.xlu1 %v873_v61, %s1706_s16  ;;  %v1487_v62 = vpop.f32.mrb[17].mxu0  ;;  %v1398_v61 = vld [vmem:[%s2064_s12] ss:$0 sm:$0xff]  ;;  %s1708_s16 = smov [#allocation2]  }
 0x5c9   : > { %v876_v63 = vpop.f32.mrb[18].mxu0 }
 0x5ca   : > { %v1488_v1 = vpop.f32.mrb[19].mxu0 }
 0x5cf   : > { %v985_v2 = vpop.f32.mrb[20].mxu0 }
 0x5d0   : > { %1000 = vrot.lane.b32.xlu0 %v985_v2, %s1707_s20  ;;  %v1499_v3 = vpop.f32.mrb[21].mxu0  ;;  %s1632_s20 = sshll.u32 %s1708_s16, 4  ;;  %s1633_s20 = int_to_ptr.vmem [resolvable:$false] %s1632_s20 }
 0x5d1   : > { %v988_v4 = vpop.f32.mrb[22].mxu0  ;;  %s1634_s2 = scalar_lea.vmem %s1633_s20, 256  ;;  %p1635_p0 = scmp.lt.s32.totalorder %s2011_s23, %s1633_s20 }
 0x5d2   : > { %v1500_v5 = vpop.f32.mrb[23].mxu0  ;;  %p1636_p1 = scmp.lt.s32.totalorder %s1634_s2, %s1628_s15 }
 0x5d4   : > { %p1637_p2 = por %p1636_p1, %p1635_p0 }
 0x5d6   : > { %p1638_p3 = pnand %p1637_p2, %p1631_p13 }
 0x612   : > { %v993_v6 = vpop.permute.xlu0 %992 }
 0x613   : > { %v1003_v9 = vsel %vm545_vm2, %v649_v51, %v993_v6 }
 0x63a   : > { %v997_v7 = vpop.permute.xlu1 %996 }
 0x63b   : > { %v1005_v10 = vsel %vm1004_vm5, %v1003_v9, %v997_v7 }
 0x642   : > { %v1001_v11 = vpop.permute.xlu0 %1000 }
 0x643   : > { %v1007_v12 = vsel %vm1006_vm6, %v1005_v10, %v1001_v11 }
 0x644   : > { %v1008_v13 = vpack.c.bf16 %v1007_v12, %v1007_v12 }
 0x646   : > { %1506 = vmatmul.mubr.msk.bf16.vlgmr.msra.gmra.mrb[12].mxu1 %vm440_vm0, %v1008_v13 }
 0x647   : > { %1533 = vmatprep.mubr.msk.bf16.mxu1 %vm1693_vm1, %v1692_v8  ;;  %1518 = vmatpush3.bf16.msra.mxu1 %v1598_v29 }
 0x648   : > { %1519 = vmatprep.subr.bf16.mxu1 %v1692_v8 }
 0x64b   : > { %1520 = vmatpush3.bf16.msra.mxu1 %v1599_v39 }
 0x64c   : > { %1521 = vmatprep.subr.bf16.mxu1 %v1692_v8 }
 0x64f   : > { %1522 = vmatpush3.bf16.msra.mxu1 %v1600_v40 }
 0x650   : > { %1523 = vmatprep.subr.bf16.mxu1 %v1692_v8 }
 0x653   : > { %1524 = vmatpush3.bf16.msra.mxu1 %v1601_v41 }
 0x654   : > { %1525 = vmatprep.subr.bf16.mxu1 %v1692_v8 }
 0x657   : > { %1526 = vmatpush3.bf16.msra.mxu1 %v1602_v42 }
 0x658   : > { %1527 = vmatprep.subr.bf16.mxu1 %v1692_v8 }
 0x65b   : > { %1528 = vmatpush3.bf16.msra.mxu1 %v1603_v43 }
 0x65c   : > { %1529 = vmatprep.subr.bf16.mxu1 %v1692_v8 }
 0x65f   : > { %1530 = vmatpush3.bf16.msra.mxu1 %v1604_v44 }
 0x660   : > { %1531 = vmatprep.subr.bf16.mxu1 %v1692_v8 }
 0x663   : > { %1532 = vmatpush3.bf16.msra.mxu1 %v1605_v45 }
 0x719   : > { %v1069_v15 = vpop.f32.mrb[12].mxu1 }
 0x71a   : > { %v1070_v16 = vadd.f32 %v1388_v14, %v1069_v15  ;;  %v1507_v17 = vpop.f32.mrb[13].mxu1 }
 0x71b   : > { %v1072_v18 = vpop.f32.mrb[14].mxu1 }
 0x71c   : > { %v1946_v19 = vadd.f32 %v1070_v16, %v1832_v0  ;;  %v1508_v20 = vpop.f32.mrb[15].mxu1  ;;  %v1597_v0 = vld [vmem:[%s2061_s9 + $0x8] sm:$0xff]  }
 0x71d   : > { %1512 = vmatpush3.bf16.msra.mxu0 %v1597_v0 }
 0x71e   : > { %v1078_v21 = vsel %vm440_vm0, %v1946_v19, 0.0 }
 0x71f   : > { %1079 = vadd.xlane.f32.xlu1 %v1078_v21 }
 0x7ac   : > { %v1080_v22 = vpop.xlane.xlu1 %1079 }
 0x7ad   : > { %v1081_v23 = vmul.f32 0.03125, %v1080_v22 }
 0x7af   : > { %v1082_v24 = vsub.f32 %v1946_v19, %v1081_v23 }
 0x7b1   : > { %v1083_v26 = vmul.f32 %v1082_v24, %v1082_v24 }
 0x7b3   : > { %v1084_v27 = vsel %vm440_vm0, %v1083_v26, 0.0 }
 0x7b4   : > { %1085 = vadd.xlane.f32.xlu0 %v1084_v27 }
 0x841   : > { %v1086_v30 = vpop.xlane.xlu0 %1085 }
 0x842   : > { %v1087_v31 = vmul.f32 0.03125, %v1086_v30 }
 0x844   : > { %v1088_v32 = vadd.f32 1e-05, %v1087_v31 }
 0x846   : > { %1624 = vrsqrt.f32 %v1088_v32 }
 0x850   : > { %v1625_v33 = vpop.eup %1624 }
 0x851   : > { %v1090_v25 = vmul.f32 %v1625_v33, %v1082_v24 }
 0x853   : > { %v1097_v36 = vmul.f32 %v1392_v34, %v1090_v25 }
 0x855   : > { %v1104_v37 = vadd.f32 %v1393_v35, %v1097_v36 }
 0x857   : > { %v1105_v38 = vpack.c.bf16 %v1104_v37, %v1104_v37 }
 0x859   : > { %1514 = vmatmul.mubr.msk.bf16.vlgmr.msra.gmra.mrb[24].mxu0 %vm440_vm0, %v1105_v38 }
 0x92c   : > { %v1166_v47 = vpop.f32.mrb[24].mxu0 }
 0x92d   : > { %v1167_v48 = vadd.f32 %v1394_v46, %v1166_v47  ;;  %v1515_v49 = vpop.f32.mrb[25].mxu0 }
 0x92e   : > { %v1169_v50 = vpop.f32.mrb[26].mxu0 }
 0x92f   : > { %v1173_v51 = vmul.f32 0.044715, %v1167_v48  ;;  %v1516_v52 = vpop.f32.mrb[27].mxu0  ;;  %v1172_v8 = vmul.f32 0.5, %v1167_v48 }
 0x931   : > { %v1174_v53 = vmul.f32 %v1173_v51, %v1167_v48 }
 0x933   : > { %v1175_v54 = vmul.f32 %v1174_v53, %v1167_v48 }
 0x935   : > { %v1176_v55 = vadd.f32 %v1175_v54, %v1167_v48 }
 0x937   : > { %v1177_v56 = vmul.f32 0.7978846, %v1176_v55 }
 0x939   : > { %1626 = vtanh.f32 %v1177_v56 }
 0x943   : > { %v1627_v57 = vpop.eup %1626 }
 0x944   : > { %v1179_v58 = vadd.f32 1.0, %v1627_v57 }
 0x946   : > { %v1180_v59 = vmul.f32 %v1179_v58, %v1172_v8 }
 0x948   : > { %v1181_v60 = vpack.c.bf16 %v1180_v59, %v1180_v59 }
 0x94a   : > { %1534 = vmatmul.mubr.bf16.vlgmr.msra.gmra.mrb[16].mxu1 %v1181_v60 }
 0xa1d   : > { %v1287_v62 = vpop.f32.mrb[16].mxu1 }
 0xa1e   : > { %v1288_v63 = vadd.f32 %v1398_v61, %v1287_v62  ;;  %v1535_v1 = vpop.f32.mrb[17].mxu1 }
 0xa1f   : > { %v1290_v2 = vpop.f32.mrb[18].mxu1 }
 0xa20   : > { %v1293_v3 = vadd.f32 %v1288_v63, %v1946_v19  ;;  %v1536_v4 = vpop.f32.mrb[19].mxu1 }
 0xa22   : > { %1294 = vst.msk [vmem:[%s431_s22] sm:$0xff] %vm440_vm0, %v1293_v3 }
 0xa23   : > { %1641 = shalt.err (!%p1638_p3)
}
 0xa24   : > { %s1642_s0 = scalar_lea.hbm %s2009_s1, 128  ;;  %s1646_s22 = scalar_lea.hbm %s2065_s13, 256 }
 0xa25   : > { %p1643_p4 = scmp.ne.s32.totalorder %s2009_s1, %s1642_s0  ;;  %p1647_p9 = scmp.lt.u32.totalorder %s2009_s1, %s2065_s13 }
 0xa26   : > { %p1648_p10 = scmp.lt.u32.totalorder %s1646_s22, %s1642_s0  ;;  %p1650_p12 = scmp.lt.u32.totalorder %s1642_s0, %s2009_s1 }
 0xa27   : > { %p1644_p7 = pnand %p1643_p4, %p1817_p5 }
 0xa28   : > { %p1649_p11 = por %p1648_p10, %p1647_p9 }
 0xa29   : > { %p1645_p8 = pneg %p1644_p7 }
 0xa2a   : > { %p1651_p13 = por %p1650_p12, %p1649_p11 }
 0xa2c   : > { %p1652_p0 = pnand %p1651_p13, %p1645_p8 }
 0xa2e   : > { %1655 = shalt.err (!%p1652_p0)
}
 0xa2f   : > { %1537 = dma.vmem_to_hbm [thread:$0]  (%p1817_p5), %s2011_s23, 128, %s2009_s1, %s1296_s29  }
 0xa30 PF: > { %p1543_p1 = scmp.ge.s32.totalorder %s1690_s28, 2  ;;  %s1321_s2 = sand.u32 1, %s1678_s25  }
 0xa31   : > { %s1322_s15 = scalar_lea.sflag [#allocation3], %s1321_s2 }
 0xa32   : > { %p1540_p2 = pnand %p1543_p1, %p1821_p6 }
 0xa34   : > { %1673 = dma.done.wait (!%p1540_p2), %s1322_s15, 128  }
 0xa35   : > { %1675 = vsyncadd (!%p1540_p2), %s1322_s15, 4294967168  ;;  %p23_p3 = scmp.ge.s32.totalorder %s1804_s14, 4   ;;  %s2074_s25 = smov %s1682_s26 }
 0xa36   : > { %s2075_s26 = smov %s1686_s27  ;;  %s2076_s27 = smov %s1815_s17 }
 0xa37   : > { %s2077_s28 = smov %s1804_s14  ;;  %25 = sbr.rel (!%p23_p3) target bundleno = 7 (0x7), region = 107 }
 0xa3e   :  { %1327 = vsyncpa [#allocation3], 1 }
 0xa3f   :  { %1329 = vsyncpa [#allocation3 + $0x1], 1 }

</bundles_post_ra>
